<compile_context>
chip_gen: v7x
topology: tpu7x:2x2x1
jax: 0.10.0
libtpu: 0.0.40
codegen_flags: <defaults>
</compile_context>

<pallas_src>
import jax
import jax.numpy as jnp
from jax.experimental import pallas as pl
from jax.experimental.pallas import tpu as pltpu


_LANES = 128                      # lane width: class dim padded to this
_SUBLANES = 8                     # sublane width: batch tile multiple of this
_VMEM_BUDGET_BYTES = 24 * 2**20   # target working set (double-buffered tiles)
_VMEM_LIMIT_BYTES = 48 * 2**20    # scoped VMEM limit (safe on v5e/v6e/v7x)


def _round_up(x, m):
    return (x + m - 1) // m * m


def _head_kernel(cls_ref, w_ref, b_ref, out_ref):
    """Fused Linear + bias + numerically-stable Softmax over the class axis.

    cls_ref: [TB, H]  (VMEM) CLS-token features for one batch tile (bf16/f32)
    w_ref:   [H, Cp]  (VMEM) linear weight, class dim zero-padded to 128 lanes
    b_ref:   [1, Cp]  (VMEM) f32 bias, padded lanes hold -inf -> softmax == 0
    out_ref: [TB, Cp] (VMEM) f32 softmax probabilities (padded lanes are 0)
    """
    # MXU matmul with f32 accumulation (bf16 x bf16 -> f32 is native).
    logits = jnp.dot(cls_ref[...], w_ref[...],
                     preferred_element_type=jnp.float32)
    logits = logits + b_ref[...]               # [TB, Cp]; padded lanes -> -inf
    m = jnp.max(logits, axis=1, keepdims=True)
    e = jnp.exp(logits - m)                    # padded lanes: exp(-inf) == 0
    denom = jnp.sum(e, axis=1, keepdims=True)
    # Exact divide: the kernel is HBM/DMA-bound, so this hides under the DMA
    # and rows sum to 1 exactly (no approx-reciprocal error).
    out_ref[...] = e / denom


def prepare_head_params(weight, bias, *, compute_dtype=jnp.bfloat16):
    """One-time (model-load) preparation of the Linear head parameters.

    weight: [H, C] (already W^T vs torch's [C, H])
    bias:   [C]
    Returns (w_p [H, Cp] in compute_dtype, b_p [1, Cp] f32) with the class dim
    zero/-inf padded to a multiple of 128 lanes.  Hoisted out of the per-call
    path so the padded copies are built exactly once.
    """
    H, C = weight.shape
    Cp = _round_up(max(C, 1), _LANES)
    w_p = jnp.zeros((H, Cp), compute_dtype).at[:, :C].set(
        weight.astype(compute_dtype))
    b_p = jnp.full((1, Cp), -jnp.inf, jnp.float32).at[0, :C].set(
        bias.astype(jnp.float32))
    return w_p, b_p


def transformer_head(last_hidden_state, w_p, b_p, num_classes, *,
                     batch_tile=1024):
    """CLS-pool + Linear + Softmax head.

    last_hidden_state: [B, S, H] (HF layout) output of the base model
    w_p, b_p:          prepared by `prepare_head_params`
    returns            [B, num_classes] class probabilities (softmax, dim=1)
    """
    B, S, H = last_hidden_state.shape
    Hw, Cp = w_p.shape
    assert Hw == H and Cp % _LANES == 0 and num_classes <= Cp

    compute_dtype = w_p.dtype

    # Only the CLS token is used downstream.  The slice + cast are cheap
    # element-wise producers; allow_input_fusion below lets XLA fuse them into
    # the pallas_call input DMA so the [B, H] slab is not materialized in HBM.
    cls = last_hidden_state[:, 0, :].astype(compute_dtype)       # [B, H]

    # TODO(synk): Dropout(p=0.5) is identity in eval mode; training-mode
    # stochastic masking is not implemented here.

    # --- batch tiling -------------------------------------------------------
    b_min = _round_up(B, _SUBLANES)
    TB = _round_up(min(batch_tile, b_min), _SUBLANES)
    # v7x megacore: if there is enough batch for two tiles, make sure the grid
    # has >= 2 blocks so both TensorCores get work.  v5e/v6e (1 TC) keep the
    # large tile (fewer grid steps, less per-step overhead).
    if b_min >= 2 * _SUBLANES and b_min // TB < 2:
        TB = _round_up(pl.cdiv(b_min, 2), _SUBLANES)
    # VMEM guard: double-buffered CLS tile + resident weight + output tiles
    # must stay well inside v7x's 64 MiB physical VMEM.
    itemsize = jnp.dtype(compute_dtype).itemsize

    def _vmem_bytes(tb):
        return (2 * tb * H * itemsize        # CLS tiles (double-buffered)
                + 2 * H * Cp * itemsize      # weight (double-buffered)
                + 2 * Cp * 4                 # bias
                + 2 * tb * Cp * 4)           # f32 output tiles

    while TB > _SUBLANES and _vmem_bytes(TB) > _VMEM_BUDGET_BYTES:
        TB = max(_SUBLANES, _round_up(TB // 2, _SUBLANES))

    Bp = _round_up(B, TB)
    if Bp == B:
        cls_in = cls                          # no pad copy needed
    else:
        cls_in = jnp.zeros((Bp, H), compute_dtype).at[:B, :].set(cls)

    # --- compiler params ----------------------------------------------------
    compiler_kwargs = dict(
        dimension_semantics=("parallel",),
        vmem_limit_bytes=_VMEM_LIMIT_BYTES,
    )
    try:
        compiler_params = pltpu.CompilerParams(
            allow_input_fusion=[True, False, False],  # fuse CLS slice/cast/pad
            **compiler_kwargs)
    except TypeError:  # older jax without allow_input_fusion: hint is optional
        compiler_params = pltpu.CompilerParams(**compiler_kwargs)

    out_p = pl.pallas_call(
        _head_kernel,
        out_shape=jax.ShapeDtypeStruct((Bp, Cp), jnp.float32),
        grid_spec=pltpu.PrefetchScalarGridSpec(
            num_scalar_prefetch=0,
            grid=(Bp // TB,),
            in_specs=[
                pl.BlockSpec((TB, H), lambda i: (i, 0)),   # CLS tile
                pl.BlockSpec((H, Cp), lambda i: (0, 0)),   # weight (resident)
                pl.BlockSpec((1, Cp), lambda i: (0, 0)),   # bias   (resident)
            ],
            out_specs=pl.BlockSpec((TB, Cp), lambda i: (i, 0)),
        ),
        compiler_params=compiler_params,
    )(cls_in, w_p, b_p)

    return out_p[:B, :num_classes]


def _reference(last_hidden_state, weight, bias):
    cls = last_hidden_state[:, 0, :]
    logits = cls @ weight + bias
    return jax.nn.softmax(logits, axis=1)


if __name__ == "__main__":
    # Small, module-consistent shapes: batch=2, seq=8, hidden=32, classes=2.
    B, S, H, C = 2, 8, 32, 2

    key = jax.random.PRNGKey(0)
    k_hid, k_w, k_b = jax.random.split(key, 3)

    # "base_model output" — synthetic last_hidden_state (the HF base model is
    # an external black box and not re-implemented here).
    last_hidden_state = jax.random.normal(k_hid, (B, S, H), dtype=jnp.float32)

    # Deterministic Linear(hidden_size=H, num_classes=C) parameters, stored as
    # W^T ([H, C]) so the kernel does cls @ W + b  ==  torch's cls @ W.T + b.
    bound = 1.0 / (H ** 0.5)
    weight = jax.random.uniform(k_w, (H, C), jnp.float32, -bound, bound)
    bias = jax.random.uniform(k_b, (C,), jnp.float32, -bound, bound)

    ref = _reference(last_hidden_state, weight, bias)

    # --- f32 streaming path: near-exact vs the reference --------------------
    w32, b32 = prepare_head_params(weight, bias, compute_dtype=jnp.float32)
    out32 = jax.block_until_ready(
        transformer_head(last_hidden_state, w32, b32, C))
    assert out32.shape == (B, C)
    assert jnp.allclose(out32, ref, atol=2e-3, rtol=2e-3), "f32 path mismatch"
    assert jnp.allclose(jnp.sum(out32, axis=1), 1.0, atol=1e-5), \
        "f32 rows must sum to 1"

    # --- default bf16 streaming path (halves HBM traffic) -------------------
    # bf16 inputs round to ~3 significant digits, hence the looser tolerance
    # vs the f32 reference; exact divide still makes rows sum to 1 exactly.
    wbf, bbf = prepare_head_params(weight, bias)          # bfloat16 default
    outbf = jax.block_until_ready(
        transformer_head(last_hidden_state, wbf, bbf, C))
    assert outbf.shape == (B, C)
    assert jnp.allclose(outbf, ref, atol=2e-2, rtol=2e-2), "bf16 path mismatch"
    assert jnp.allclose(jnp.sum(outbf, axis=1), 1.0, atol=1e-5), \
        "bf16 rows must sum to 1"

    print("KERNEL_OK")
</pallas_src>

<mosaic_0001>
module attributes {stable_mosaic.version = 11 : i64} {
  func.func @_head_kernel(%arg0: i32, %arg1: memref<8x32xf32, #tpu.memory_space<vmem>>, %arg2: memref<32x128xf32, #tpu.memory_space<vmem>>, %arg3: memref<1x128xf32, #tpu.memory_space<vmem>>, %arg4: memref<8x128xf32, #tpu.memory_space<vmem>>) attributes {dimension_semantics = [#tpu.dimension_semantics<parallel>], iteration_bounds = array<i64: 1>, scalar_prefetch = 0 : i64, scratch_operands = 0 : i64, tpu.core_type = #tpu.core_type<tc>, window_params = [{transform_indices = @transform_0, window_bounds = array<i64: 8, 32>}, {pipeline_mode = #tpu.pipeline_mode<synchronous>, transform_indices = @transform_1, window_bounds = array<i64: 32, 128>}, {pipeline_mode = #tpu.pipeline_mode<synchronous>, transform_indices = @transform_2, window_bounds = array<i64: 1, 128>}, {transform_indices = @transform_3, window_bounds = array<i64: 8, 128>}]} {
    %c0 = arith.constant 0 : index
    %c0_0 = arith.constant 0 : index
    %0 = vector.load %arg1[%c0, %c0_0] : memref<8x32xf32, #tpu.memory_space<vmem>>, vector<8x32xf32>
    %c0_1 = arith.constant 0 : index
    %c0_2 = arith.constant 0 : index
    %1 = vector.load %arg2[%c0_1, %c0_2] : memref<32x128xf32, #tpu.memory_space<vmem>>, vector<32x128xf32>
    %cst = arith.constant dense<0.000000e+00> : vector<8x128xf32>
    %2 = tpu.matmul %0, %1, %cst {dimension_numbers = #tpu.dot_dimension_numbers<[1], [0], [0], [1], [0, 0, 1, 1], [], []>} : vector<8x32xf32>, vector<32x128xf32>, vector<8x128xf32> -> vector<8x128xf32>
    %c0_3 = arith.constant 0 : index
    %c0_4 = arith.constant 0 : index
    %3 = vector.load %arg3[%c0_3, %c0_4] : memref<1x128xf32, #tpu.memory_space<vmem>>, vector<1x128xf32>
    %4 = vector.broadcast %3 : vector<1x128xf32> to vector<8x128xf32>
    %5 = arith.addf %2, %4 : vector<8x128xf32>
    %cst_5 = arith.constant dense<0xFF800000> : vector<8xf32>
    %6 = vector.multi_reduction <maximumf>, %5, %cst_5 [1] : vector<8x128xf32> to vector<8xf32>
    %7 = vector.shape_cast %6 : vector<8xf32> to vector<8x1xf32>
    %8 = vector.broadcast %7 : vector<8x1xf32> to vector<8x128xf32>
    %9 = arith.subf %5, %8 : vector<8x128xf32>
    %10 = math.exp %9 : vector<8x128xf32>
    %cst_6 = arith.constant dense<0.000000e+00> : vector<8xf32>
    %11 = vector.multi_reduction <add>, %10, %cst_6 [1] : vector<8x128xf32> to vector<8xf32>
    %12 = vector.shape_cast %11 : vector<8xf32> to vector<8x1xf32>
    %13 = vector.broadcast %12 : vector<8x1xf32> to vector<8x128xf32>
    %14 = arith.divf %10, %13 : vector<8x128xf32>
    %c0_7 = arith.constant 0 : index
    %c0_8 = arith.constant 0 : index
    %15 = vector.load %arg4[%c0_7, %c0_8] : memref<8x128xf32, #tpu.memory_space<vmem>>, vector<8x128xf32>
    tpu.vector_store %arg4[%c0_7, %c0_8], %14 {strides = array<i32>} : memref<8x128xf32, #tpu.memory_space<vmem>>, vector<8x128xf32>,
    return
  }
  func.func @transform_0(%arg0: i32) -> (i32, i32) {
    %c0_i32 = arith.constant 0 : i32
    %c0_i32_0 = arith.constant 0 : i32
    return %arg0, %c0_i32 : i32, i32
  }
  func.func @transform_1(%arg0: i32) -> (i32, i32) {
    %c0_i32 = arith.constant 0 : i32
    %c0_i32_0 = arith.constant 0 : i32
    %c0_i32_1 = arith.constant 0 : i32
    return %c0_i32, %c0_i32_0 : i32, i32
  }
  func.func @transform_2(%arg0: i32) -> (i32, i32) {
    %c0_i32 = arith.constant 0 : i32
    %c0_i32_0 = arith.constant 0 : i32
    %c0_i32_1 = arith.constant 0 : i32
    return %c0_i32, %c0_i32_0 : i32, i32
  }
  func.func @transform_3(%arg0: i32) -> (i32, i32) {
    %c0_i32 = arith.constant 0 : i32
    %c0_i32_0 = arith.constant 0 : i32
    return %arg0, %c0_i32 : i32, i32
  }
}

</mosaic_0001>

<bundles_post_ra>
// kernel: tpu_custom_call.1
= control target key start
LH: loop header
LB: loop body
LE: loop exit
PB: predicated region body
PF: predicated region fallthrough
CT: control target
= control target key end

     0   :  { %8 = vsyncpa [#allocation3], 0  ;;  %s335_s0 = inlined_call_operand.hbm [shape: f32[8,32], index: 0, kind: input, shape index: {}]   ;;  %s336_s1 = inlined_call_operand.hbm [shape: f32[32,128], index: 1, kind: input, shape index: {}]   ;;  %s337_s2 = inlined_call_operand.vmem [shape: f32[1,128], index: 2, kind: input, shape index: {}]   ;;  %s338_s3 = inlined_call_operand.hbm [shape: f32[8,128], index: 3, kind: output, shape index: {}]  }
   0x1   :  { %9 = vsyncpa [#allocation6], 0 }
   0x2   :  { %10 = vsyncpa [#allocation4], 0  ;;  %s261_s12 = smov [#allocation2]   ;;  %s262_s14 = smov [#allocation5]  }
   0x3   :  { %s17_s13 = sshll.u32 %s261_s12, 4  ;;  %s26_s15 = sshll.u32 %s262_s14, 4  ;;  %s18_s13 = int_to_ptr.vmem [resolvable:$true] %s17_s13  ;;  %s289_s15 = int_to_ptr.vmem [resolvable:$true] %s26_s15 }
   0x4   :  { %s189_s18 = scalar_lea.hbm %s335_s0, 128 }
   0x5   :  { %p190_p0 = scmp.ne.s32.totalorder %s335_s0, %s189_s18  ;;  %p193_p1 = scmp.lt.u32.totalorder %s189_s18, %s335_s0 }
   0x7   :  { %p195_p2 = pnand %p193_p1, %p190_p0 }
   0x9   :  { %198 = shalt.err (!%p195_p2)
}
   0xa   :  { %s199_s23 = scalar_lea.vmem %s18_s13, 128  ;;  %p204_p4 = scmp.lt.s32.totalorder %s18_s13, %s18_s13 }
   0xb   :  { %p200_p3 = scmp.ne.s32.totalorder %s18_s13, %s199_s23  ;;  %p205_p5 = scmp.lt.s32.totalorder %s199_s23, %s199_s23 }
   0xd   :  { %p206_p6 = por %p205_p5, %p204_p4 }
   0xf   :  { %p207_p7 = pnand %p206_p6, %p200_p3 }
  0x11   :  { %210 = shalt.err (!%p207_p7)
}
  0x12   :  { %20 = dma.hbm_to_vmem [thread:$0]  %s335_s0, 128, %s18_s13, [#allocation3]  }
  0x13   :  { %s211_s28 = scalar_lea.hbm %s336_s1, 512 }
  0x14   :  { %p212_p8 = scmp.ne.s32.totalorder %s336_s1, %s211_s28  ;;  %p215_p9 = scmp.lt.u32.totalorder %s211_s28, %s336_s1 }
  0x16   :  { %p217_p10 = pnand %p215_p9, %p212_p8 }
  0x18   :  { %220 = shalt.err (!%p217_p10)
}
  0x19   :  { %s221_s6 = scalar_lea.vmem %s289_s15, 512  ;;  %p226_p12 = scmp.lt.s32.totalorder %s289_s15, %s289_s15 }
  0x1a   :  { %p222_p11 = scmp.ne.s32.totalorder %s289_s15, %s221_s6  ;;  %p227_p13 = scmp.lt.s32.totalorder %s221_s6, %s221_s6 }
  0x1c   :  { %p228_p0 = por %p227_p13, %p226_p12 }
  0x1e   :  { %p229_p1 = pnand %p228_p0, %p222_p11 }
  0x20   :  { %232 = shalt.err (!%p229_p1)
}
  0x21   :  { %s263_s0 = smov 128   ;;  %s264_s7 = smov 8  }
  0x22   :  { %32 = dma.hbm_to_vmem [thread:$0]  %s336_s1, 512, %s289_s15, [#allocation6], %s263_s0, %s263_s0, %s264_s7  }
  0x23   :  { %255 = dma.done.wait [#allocation3], 128  }
  0x24   :  { %256 = vsyncadd [#allocation3], 4294967168 }
  0x25   :  { %257 = dma.done.wait [#allocation6], 512  }
  0x26   :  { %258 = vsyncadd [#allocation6], 4294966784  ;;  %v265_v0 = vmov 0.0|0.0   ;;  %vm266_vm0 = vmmov 0   ;;  %v267_v1 = vmov 0.0   ;;  %v42_v2 = vld [vmem:[#allocation5] sm:$0xff] }
  0x27   :  { %171 = vmatprep.subr.bf16.mxu0 %v265_v0  ;;  %168 = vmatprep.mubr.msk.f32.mxu0 %vm266_vm0, %v267_v1  ;;  %v43_v3 = vld [vmem:[#allocation5 + $0x8] sm:$0xff]  ;;  %v44_v4 = vld [vmem:[#allocation5 + $0x10] sm:$0xff]  ;;  %v45_v6 = vld [vmem:[#allocation5 + $0x18] sm:$0xff]  ;;  %vm53_vm1 = vcmask 261120   ;;  %s268_s11 = smov [#allocation7]  }
  0x28   :  { %v172_v5 = vpack.c.bf16 %v43_v3, %v42_v2  ;;  %v175_v7 = vpack.c.bf16 %v45_v6, %v44_v4  ;;  %v41_v8 = vld [vmem:[#allocation2] sm:$0xff]  ;;  %s143_s12 = sshll.u32 %s268_s11, 4  ;;  %s144_s12 = int_to_ptr.vmem [resolvable:$true] %s143_s12 }
  0x29   :  { %v153_v9 = vld [vmem:[%s337_s2] ss:$0 sm:$0xff]  ;;  %s233_s13 = scalar_lea.vmem %s144_s12, 128  ;;  %p238_p3 = scmp.lt.s32.totalorder %s144_s12, %s144_s12 }
  0x2a   :  { %173 = vmatpush3.bf16.msra.mxu0 %v172_v5  ;;  %p234_p2 = scmp.ne.s32.totalorder %s144_s12, %s233_s13  ;;  %p239_p4 = scmp.lt.s32.totalorder %s233_s13, %s233_s13 }
  0x2b   :  { %174 = vmatprep.subr.bf16.mxu0 %v265_v0 }
  0x2c   :  { %p240_p5 = por %p239_p4, %p238_p3 }
  0x2e   :  { %176 = vmatpush3.bf16.msra.mxu0 %v175_v7  ;;  %p241_p6 = pnand %p240_p5, %p234_p2 }
  0x31   :  { %169 = vmatmul.mubr.msk.f32.vlgmr.msra.gmra.mrb[0].mxu0 %vm53_vm1, %v41_v8 }
 0x104   :  { %v123_v10 = vpop.f32.mrb[0].mxu0 }
 0x105   :  { %v124_v11 = vadd.f32 %v153_v9, %v123_v10  ;;  %v170_v12 = vpop.f32.mrb[1].mxu0 }
 0x107   :  { %127 = vmax.xlane.f32.xlu0 %v124_v11 }
 0x194   :  { %v128_v13 = vpop.xlane.xlu0 %127 }
 0x195   :  { %v129_v14 = vsub.f32 %v124_v11, %v128_v13 }
 0x197   :  { %v130_v15 = vmul.f32 1.442695, %v129_v14 }
 0x199   :  { %185 = vpow2.f32 %v130_v15 }
 0x1a3   :  { %v186_v16 = vpop.eup %185 }
 0x1a4   :  { %132 = vadd.xlane.f32.xlu0 %v186_v16 }
 0x231   :  { %v133_v17 = vpop.xlane.xlu0 %132 }
 0x232   :  { %187 = vrcp.f32 %v133_v17 }
 0x23c   :  { %v188_v18 = vpop.eup %187 }
 0x23d   :  { %v135_v19 = vmul.f32 %v188_v18, %v186_v16 }
 0x23f   :  { %136 = vst [vmem:[#allocation7] sm:$0xff] %v135_v19 }
 0x240   :  { %244 = shalt.err (!%p241_p6)
}
 0x241   :  { %s245_s15 = scalar_lea.hbm %s338_s3, 128 }
 0x242   :  { %p246_p7 = scmp.ne.s32.totalorder %s338_s3, %s245_s15  ;;  %p249_p8 = scmp.lt.u32.totalorder %s245_s15, %s338_s3 }
 0x244   :  { %p251_p9 = pnand %p249_p8, %p246_p7 }
 0x246   :  { %254 = shalt.err (!%p251_p9)
}
 0x247   :  { %146 = dma.vmem_to_hbm [thread:$0]  %s144_s12, 128, %s338_s3, [#allocation4]  }
 0x248   :  { %259 = dma.done.wait [#allocation4], 128  }
 0x249   :  { %260 = vsyncadd [#allocation4], 4294967168 }
 0x24a   :  { %150 = vsyncpa [#allocation3], 1 }
 0x24b   :  { %151 = vsyncpa [#allocation6], 1 }
 0x24c   :  { %152 = vsyncpa [#allocation4], 1 }

</bundles_post_ra>
